<compile_context>
chip_gen: v5e
topology: v5e:2x2
jax: 0.10.0
libtpu: 0.0.40
codegen_flags: <defaults>
</compile_context>

<pallas_src>
import jax
import jax.numpy as jnp
from jax.experimental import pallas as pl
from jax.experimental.pallas import tpu as pltpu


def _round_up(x, m):
    return ((x + m - 1) // m) * m


_SINGLE_BUFFER_BYTES = 1 << 20  # single-buffer resident weights above 1 MiB


def _rep_linear_kernel(x_ref, w_ref, b_ref, o_ref):
    """One row-tile:  o = x @ W_total + b_total.

    x_ref : (tm, Cin)    bf16 activations
    w_ref : (Cin, Cout)  bf16 fully-folded weight (branch convs + BNs + fc)
    b_ref : (1, Cout)    f32  fully-folded bias
    o_ref : (tm, Cout)
    """
    acc = jnp.dot(x_ref[...], w_ref[...], preferred_element_type=jnp.float32)
    o_ref[...] = (acc + b_ref[...]).astype(o_ref.dtype)


def rep_linear_forward(x, params, *, tm=None):
    """x: (B, L, C_in) -> (B, L, C_out). Eval-mode (running-stats) BN."""
    B, L, Cin = x.shape
    w_branch = params["w_branch"]                      # (n, C_out, C_in)
    n, Cout, _ = w_branch.shape
    assert Cin == Cout, "plain-BN branch requires in_dim == out_dim"
    eps = params["eps"]

    # ---- fold eval-mode BN into per-channel scale/shift (parameter glue) ----
    br_scale = params["br_gamma"] / jnp.sqrt(params["br_rv"] + eps)       # (n, C)
    br_shift = params["br_beta"] - params["br_rm"] * br_scale             # (n, C)
    bn_scale = params["bn_gamma"] / jnp.sqrt(params["bn_rv"] + eps)       # (C,)
    bn_shift = params["bn_beta"] - params["bn_rm"] * bn_scale             # (C,)

    # ---- collapse the n+1 branches AND the fc conv into ONE matmul (f32) ----
    wbT = jnp.transpose(w_branch, (0, 2, 1))                              # (n, C, C)
    w_sum = jnp.sum(wbT * br_scale[:, None, :], axis=0) + jnp.diag(bn_scale)
    shift_total = bn_shift + jnp.sum(br_shift, axis=0)                    # (C,)
    wfcT = params["w_fc"].T                                               # (C, Cout)
    w_total = (w_sum @ wfcT).astype(jnp.bfloat16)                         # (C, Cout)
    b_total = (shift_total @ wfcT + params["b_fc"]).astype(jnp.float32)   # (Cout,)
    b_total = b_total.reshape(1, Cout)

    # ---- rows as (M, Cin) in bf16: reshape is free, cast halves input HBM ----
    M = B * L
    xm = x.reshape(M, Cin).astype(jnp.bfloat16)

    if tm is None:
        tm = 512 if max(Cin, Cout) <= 512 else 256
    tm = min(tm, _round_up(M, 8))          # never a block larger than the data
    grid = pl.cdiv(M, tm)                  # ragged last block -> masked stores

    # Single-buffer the grid-invariant weight/bias once they are big enough to
    # matter for VMEM (halves resident weight footprint at large C).
    w_bytes = Cin * Cout * 2
    resident = {}
    if w_bytes >= _SINGLE_BUFFER_BYTES:
        resident = dict(pipeline_mode=pl.Buffered(1))
    w_buffers = 1 if resident else 2

    out_itemsize = jnp.dtype(x.dtype).itemsize
    vmem_needed = (w_bytes * w_buffers + Cout * 4 * 2
                   + (tm * Cin * 2 + tm * Cout * out_itemsize) * 2)
    vmem_limit = int(min(max(1.5 * vmem_needed + (1 << 20), 4 << 20), 64 << 20))

    # TODO(synk): once Cin*Cout*2 exceeds ~16 MiB (v7x: 64 MiB VMEM / 32 MiB
    # default scoped), add N (lane) and K grid axes tiling w_total with an f32
    # VMEM accumulator (init/finalize via pl.when, K axis "arbitrary").

    out = pl.pallas_call(
        _rep_linear_kernel,
        out_shape=jax.ShapeDtypeStruct((M, Cout), x.dtype),
        grid_spec=pltpu.PrefetchScalarGridSpec(
            num_scalar_prefetch=0,
            grid=(grid,),
            in_specs=[
                pl.BlockSpec((tm, Cin), lambda i: (i, 0)),                 # x rows
                pl.BlockSpec((Cin, Cout), lambda i: (0, 0), **resident),   # W_total
                pl.BlockSpec((1, Cout), lambda i: (0, 0), **resident),     # b_total
            ],
            out_specs=pl.BlockSpec((tm, Cout), lambda i: (i, 0)),
        ),
        compiler_params=pltpu.CompilerParams(
            dimension_semantics=("parallel",),   # rows shard across v7x's 2 TCs
            vmem_limit_bytes=vmem_limit),
    )(xm, w_total, b_total)

    return out.reshape(B, L, Cout)


def _reference_forward(x, params):
    """Pure-JAX reference matching eval-mode PyTorch forward (for checking)."""
    eps = params["eps"]
    n = params["w_branch"].shape[0]
    s = ((x - params["bn_rm"]) / jnp.sqrt(params["bn_rv"] + eps)
         * params["bn_gamma"] + params["bn_beta"])
    for i in range(n):
        h = jnp.einsum("blc,oc->blo", x, params["w_branch"][i])
        h = ((h - params["br_rm"][i]) / jnp.sqrt(params["br_rv"][i] + eps)
             * params["br_gamma"][i] + params["br_beta"][i])
        s = s + h
    return jnp.einsum("blc,oc->blo", s, params["w_fc"]) + params["b_fc"]


def make_params(key, in_dim, out_dim, n):
    assert in_dim == out_dim, "plain-BN branch requires in_dim == out_dim"
    ks = jax.random.split(key, 12)
    p = {
        "w_branch": 0.1 * jax.random.normal(ks[0], (n, out_dim, in_dim), jnp.float32),
        "br_gamma": jax.random.uniform(ks[1], (n, out_dim), jnp.float32, 0.5, 1.5),
        "br_beta":  0.1 * jax.random.normal(ks[2], (n, out_dim), jnp.float32),
        "br_rm":    0.1 * jax.random.normal(ks[3], (n, out_dim), jnp.float32),
        "br_rv":    jax.random.uniform(ks[4], (n, out_dim), jnp.float32, 0.5, 1.5),
        "bn_gamma": jax.random.uniform(ks[5], (in_dim,), jnp.float32, 0.5, 1.5),
        "bn_beta":  0.1 * jax.random.normal(ks[6], (in_dim,), jnp.float32),
        "bn_rm":    0.1 * jax.random.normal(ks[7], (in_dim,), jnp.float32),
        "bn_rv":    jax.random.uniform(ks[8], (in_dim,), jnp.float32, 0.5, 1.5),
        "w_fc":     0.1 * jax.random.normal(ks[9], (out_dim, in_dim), jnp.float32),
        "b_fc":     0.1 * jax.random.normal(ks[10], (out_dim,), jnp.float32),
        "eps": 1e-5,
    }
    return p


if __name__ == "__main__":
    in_dim = out_dim = 32
    n = 2
    B, L = 2, 8

    key = jax.random.PRNGKey(0)
    kx, kp = jax.random.split(key)
    x = jax.random.normal(kx, (B, L, in_dim), jnp.float32)
    params = make_params(kp, in_dim, out_dim, n)

    out = rep_linear_forward(x, params)
    out = jax.block_until_ready(out)

    ref = _reference_forward(x, params)
    assert out.shape == (B, L, out_dim)
    # bf16 MXU path -> looser tolerance than pure-f32
    assert jnp.allclose(out, ref, atol=3e-2, rtol=3e-2), "mismatch vs reference"

    print("KERNEL_OK")
</pallas_src>

<mosaic_0001>
module attributes {stable_mosaic.version = 11 : i64} {
  func.func @_rep_linear_kernel(%arg0: i32, %arg1: memref<16x32xbf16, #tpu.memory_space<vmem>>, %arg2: memref<32x32xbf16, #tpu.memory_space<vmem>>, %arg3: memref<1x32xf32, #tpu.memory_space<vmem>>, %arg4: memref<16x32xf32, #tpu.memory_space<vmem>>) attributes {dimension_semantics = [#tpu.dimension_semantics<parallel>], iteration_bounds = array<i64: 1>, scalar_prefetch = 0 : i64, scratch_operands = 0 : i64, tpu.core_type = #tpu.core_type<tc>, window_params = [{transform_indices = @transform_0, window_bounds = array<i64: 16, 32>}, {pipeline_mode = #tpu.pipeline_mode<synchronous>, transform_indices = @transform_1, window_bounds = array<i64: 32, 32>}, {pipeline_mode = #tpu.pipeline_mode<synchronous>, transform_indices = @transform_2, window_bounds = array<i64: 1, 32>}, {transform_indices = @transform_3, window_bounds = array<i64: 16, 32>}]} {
    %c0 = arith.constant 0 : index
    %c0_0 = arith.constant 0 : index
    %0 = vector.load %arg1[%c0, %c0_0] : memref<16x32xbf16, #tpu.memory_space<vmem>>, vector<16x32xbf16>
    %c0_1 = arith.constant 0 : index
    %c0_2 = arith.constant 0 : index
    %1 = vector.load %arg2[%c0_1, %c0_2] : memref<32x32xbf16, #tpu.memory_space<vmem>>, vector<32x32xbf16>
    %cst = arith.constant dense<0.000000e+00> : vector<16x32xf32>
    %2 = tpu.matmul %0, %1, %cst {dimension_numbers = #tpu.dot_dimension_numbers<[1], [0], [0], [1], [0, 0, 1, 1], [], []>} : vector<16x32xbf16>, vector<32x32xbf16>, vector<16x32xf32> -> vector<16x32xf32>
    %c0_3 = arith.constant 0 : index
    %c0_4 = arith.constant 0 : index
    %3 = vector.load %arg3[%c0_3, %c0_4] : memref<1x32xf32, #tpu.memory_space<vmem>>, vector<1x32xf32>
    %4 = vector.broadcast %3 : vector<1x32xf32> to vector<16x32xf32>
    %5 = arith.addf %2, %4 : vector<16x32xf32>
    %c0_5 = arith.constant 0 : index
    %c0_6 = arith.constant 0 : index
    %6 = vector.load %arg4[%c0_5, %c0_6] : memref<16x32xf32, #tpu.memory_space<vmem>>, vector<16x32xf32>
    tpu.vector_store %arg4[%c0_5, %c0_6], %5 {strides = array<i32>} : memref<16x32xf32, #tpu.memory_space<vmem>>, vector<16x32xf32>,
    return
  }
  func.func @transform_0(%arg0: i32) -> (i32, i32) {
    %c0_i32 = arith.constant 0 : i32
    %c0_i32_0 = arith.constant 0 : i32
    return %arg0, %c0_i32 : i32, i32
  }
  func.func @transform_1(%arg0: i32) -> (i32, i32) {
    %c0_i32 = arith.constant 0 : i32
    %c0_i32_0 = arith.constant 0 : i32
    %c0_i32_1 = arith.constant 0 : i32
    return %c0_i32, %c0_i32_0 : i32, i32
  }
  func.func @transform_2(%arg0: i32) -> (i32, i32) {
    %c0_i32 = arith.constant 0 : i32
    %c0_i32_0 = arith.constant 0 : i32
    %c0_i32_1 = arith.constant 0 : i32
    return %c0_i32, %c0_i32_0 : i32, i32
  }
  func.func @transform_3(%arg0: i32) -> (i32, i32) {
    %c0_i32 = arith.constant 0 : i32
    %c0_i32_0 = arith.constant 0 : i32
    return %arg0, %c0_i32 : i32, i32
  }
}

</mosaic_0001>

<bundles_post_ra>
// kernel: tpu_custom_call.1
= control target key start
LH: loop header
LB: loop body
LE: loop exit
PB: predicated region body
PF: predicated region fallthrough
CT: control target
= control target key end

     0   :  { %8 = vsyncpa [#allocation3], 0  ;;  %s256_s0 = inlined_call_operand.hbm [shape: bf16[16,32], index: 0, kind: input, shape index: {}]   ;;  %s257_s1 = inlined_call_operand.hbm [shape: bf16[32,32], index: 1, kind: input, shape index: {}]   ;;  %s258_s2 = inlined_call_operand.vmem [shape: f32[1,32], index: 2, kind: input, shape index: {}]   ;;  %s259_s3 = inlined_call_operand.hbm [shape: f32[16,32], index: 3, kind: output, shape index: {}]  }
   0x1   :  { %9 = vsyncpa [#allocation6], 0 }
   0x2   :  { %10 = vsyncpa [#allocation4], 0  ;;  %s15_s14 = sshll.u32 %s256_s0, 4  ;;  %s217_s15 = smov [#allocation2]   ;;  %s16_s14 = int_to_ptr.hbm [resolvable:$true] %s15_s14 }
   0x3   :  { %s17_s16 = sshll.u32 %s217_s15, 4  ;;  %s28_s19 = sshll.u32 %s257_s1, 4  ;;  %s18_s16 = int_to_ptr.vmem [resolvable:$true] %s17_s16  ;;  %s29_s19 = int_to_ptr.hbm [resolvable:$true] %s28_s19 }
   0x4   :  { %s218_s20 = smov 64   ;;  %s219_s21 = smov 4  }
   0x5   :  { %23 = dma.hbm_to_vmem [thread:$0]  %s16_s14, 128, %s18_s16, [#allocation3], %s218_s20, %s218_s20, %s219_s21  }
   0x6   :  { %s220_s22 = smov [#allocation5]  }
   0x7   :  { %s30_s23 = sshll.u32 %s220_s22, 4  ;;  %s31_s23 = int_to_ptr.vmem [resolvable:$true] %s30_s23 }
   0x8   :  { %36 = dma.hbm_to_vmem [thread:$0]  %s29_s19, 256, %s31_s23, [#allocation6], %s218_s20, %s218_s20, %s219_s21  }
   0x9   :  { %211 = dma.done.wait [#allocation3], 128  }
   0xa   :  { %212 = vsyncadd [#allocation3], 4294967168 }
   0xb   :  { %213 = dma.done.wait [#allocation6], 256  }
   0xc   :  { %214 = vsyncadd [#allocation6], 4294967040  ;;  %v130_v0 = vld [vmem:[#allocation5 + $0x8] sm:$0xff]  ;;  %v129_v1 = vld [vmem:[#allocation5] sm:$0xff]  ;;  %vm75_vm0 = vcmask 261120   ;;  %s221_s24 = smov [#allocation7]  }
   0xd   :  { %85 = vmatpush.bf16.msra.mxu0 %v130_v0  ;;  %v128_v2 = vld [vmem:[#allocation2] sm:$0xff]  ;;  %s99_s25 = sshll.u32 %s221_s24, 4  ;;  %s101_s28 = sshll.u32 %s259_s3, 4  ;;  %s100_s25 = int_to_ptr.vmem [resolvable:$true] %s99_s25  ;;  %s102_s28 = int_to_ptr.hbm [resolvable:$true] %s101_s28 }
   0xe   :  { %v138_v3 = vld [vmem:[%s258_s2] ss:$0 sm:$0xff]  ;;  %s222_s29 = smov 128   ;;  %s223_s30 = smov 8  }
  0x11   :  { %86 = vmatpush.bf16.msra.mxu0 %v129_v1 }
  0x14   :  { %127 = vmatmul.msk.bf16.vlgmr.msra.gmra.mxu0 %vm75_vm0, %v128_v2 }
  0x91   :  { %v88_v4 = vpop.f32.mrf.mxu0 }
  0x92   :  { %v89_v5 = vadd.f32 %v138_v3, %v88_v4 }
  0x94   :  { %93 = vst.msk [vmem:[#allocation7] sm:$0xff] %vm75_vm0, %v89_v5 }
  0x99   :  { %v90_v6 = vpop.f32.mrf.mxu0 }
  0x9a   :  { %v91_v7 = vadd.f32 %v138_v3, %v90_v6 }
  0x9c   :  { %94 = vst.msk [vmem:[#allocation7 + $0x8] sm:$0xff] %vm75_vm0, %v91_v7 }
  0x9d   :  { %107 = dma.vmem_to_hbm [thread:$0]  %s100_s25, 256, %s102_s28, [#allocation4], %s222_s29, %s222_s29, %s223_s30  }
  0x9e   :  { %215 = dma.done.wait [#allocation4], 256  }
  0x9f   :  { %216 = vsyncadd [#allocation4], 4294967040 }
  0xa0   :  { %112 = vsyncpa [#allocation3], 1 }
  0xa1   :  { %113 = vsyncpa [#allocation6], 1 }
  0xa2   :  { %114 = vsyncpa [#allocation4], 1 }

</bundles_post_ra>
